<compile_context>
chip_gen: v7x
topology: tpu7x:2x2x1
jax: 0.10.0
libtpu: 0.0.40
codegen_flags: <defaults>
</compile_context>

<pallas_src>
import functools

import jax
import jax.numpy as jnp
from jax.experimental import pallas as pl
from jax.experimental.pallas import tpu as pltpu


# ----------------------------------------------------------------------------
# Pallas kernel: fused per-channel affine on a (b_blk, c_blk, s_blk) tile.
# ----------------------------------------------------------------------------
def _actnorm_kernel(x_ref, scale_ref, shift_ref, o_ref, *, c_blk):
    # scale/shift are full (1, C, 1) VMEM-resident blocks (constant index_map,
    # fetched once).  Slice the current channel window only if C is tiled.
    if scale_ref.shape[1] == c_blk:
        scale = scale_ref[...]
        shift = shift_ref[...]
    else:
        c0 = pl.multiple_of(pl.program_id(1) * c_blk, c_blk)
        scale = scale_ref[:, pl.ds(c0, c_blk), :]
        shift = shift_ref[:, pl.ds(c0, c_blk), :]
    o_ref[...] = (x_ref[...] * scale + shift).astype(o_ref.dtype)


# ----------------------------------------------------------------------------
# Block-size selection (chip- and dtype-aware).
# ----------------------------------------------------------------------------
def _physical_vmem_bytes():
    try:
        info = pltpu.get_tpu_info()
        cap = int(getattr(info, "vmem_capacity_bytes", 0))
        if cap > 0:
            return cap
    except Exception:
        pass
    return 64 * 1024 * 1024  # conservative (v7x per-TC) fallback


def _sublane_granularity(dtype):
    # f32 -> 8, bf16 -> 16, int8/fp8 -> 32 (sub-32-bit dtypes pack sublanes).
    itemsize = jnp.dtype(dtype).itemsize
    return max(8, 32 // max(itemsize, 1))


def _choose_blocks(B, C, HW, dtype, budget_bytes):
    """Pick (b_blk, c_blk, s_blk).  `HW` must be a multiple of 128 or be the
    full (un-tiled) spatial extent.  Keeps blocks within `budget_bytes` for the
    double-buffered in+out copies (4x one block)."""
    itemsize = jnp.dtype(dtype).itemsize
    gran = _sublane_granularity(dtype)
    per_block = max(budget_bytes // 4, 8 * 128 * itemsize)

    def c_divisors():
        yield C
        c = (C // gran) * gran
        while c >= gran:
            if C % c == 0:
                yield c
            c -= gran

    def s_divisors():
        yield HW
        s = (HW // 128) * 128
        while s >= 128:
            if HW % s == 0:
                yield s
            s -= 128

    # Start from the full (C, HW) slab; shrink channels first, then spatial.
    c_blk, s_blk = C, HW
    if c_blk * s_blk * itemsize > per_block:
        for c in c_divisors():
            if c * s_blk * itemsize <= per_block:
                c_blk = c
                break
        else:
            c_blk = gran if (C % gran == 0 and gran <= C) else C
    if c_blk * s_blk * itemsize > per_block:
        for s in s_divisors():
            if c_blk * s * itemsize <= per_block:
                s_blk = s
                break
        else:
            s_blk = 128 if HW % 128 == 0 else HW  # last-resort fallback

    # Amortize per-step overhead: pack several batch images per grid step.
    b_blk = 1
    slab = c_blk * s_blk * itemsize
    if c_blk == C and s_blk == HW and slab > 0:
        b_max = max(1, min(B, per_block // slab))
        for b in range(b_max, 0, -1):
            if B % b == 0:
                b_blk = b
                break

    # v7x: keep >= 2 grid steps so both TensorCores get work.
    steps = (B // b_blk) * (C // c_blk) * (HW // s_blk)
    if steps < 2:
        if b_blk > 1:
            for b in range(b_blk // 2, 0, -1):
                if B % b == 0:
                    b_blk = b
                    break
        elif s_blk > 128 and HW % 128 == 0:
            for s in s_divisors():
                if s < s_blk:
                    s_blk = s
                    break
        elif c_blk > gran and C % gran == 0:
            for c in c_divisors():
                if c < c_blk:
                    c_blk = c
                    break
        # else: a single tiny block; nothing worth splitting.
    return b_blk, c_blk, s_blk


# ----------------------------------------------------------------------------
# Apply (jit wrapper around the pallas_call).
# ----------------------------------------------------------------------------
@functools.partial(jax.jit, static_argnames=("reverse",))
def _actnorm_apply(x, bias, logs, *, reverse=False):
    B, C, H, W = x.shape
    HW = H * W
    itemsize = jnp.dtype(x.dtype).itemsize

    # Lane-dense layout: flatten (H, W) -> HW; pad to a 128 multiple if needed
    # so stores stay unmasked and divisor-based tiling always succeeds.
    x2 = x.reshape(B, C, HW)
    HW_pad = HW
    if HW % 128 != 0:
        HW_pad = ((HW + 127) // 128) * 128
        x2 = jnp.pad(x2, ((0, 0), (0, 0), (0, HW_pad - HW)))

    # Hoist exp()/sign to the wrapper: kernel is a single y = x*scale + shift.
    bias_f = bias.reshape(1, C, 1).astype(jnp.float32)
    logs_f = logs.reshape(1, C, 1).astype(jnp.float32)
    if not reverse:
        scale = jnp.exp(logs_f)          # y = (x + b) * e^logs
        shift = bias_f * scale
    else:
        scale = jnp.exp(-logs_f)         # y = x * e^(-logs) - b
        shift = -bias_f
    if itemsize < 4:                     # keep bf16 inputs in bf16 on the VPU
        scale = scale.astype(x.dtype)
        shift = shift.astype(x.dtype)
    param_itemsize = jnp.dtype(scale.dtype).itemsize

    # Chip-aware VMEM budget (v5e/v6e: 128 MiB physical, v7x: 64 MiB).
    phys_vmem = _physical_vmem_bytes()
    budget = min(phys_vmem // 4, 24 * 1024 * 1024)
    b_blk, c_blk, s_blk = _choose_blocks(B, C, HW_pad, x.dtype, budget)
    grid = (B // b_blk, C // c_blk, HW_pad // s_blk)

    blocks_bytes = 4 * b_blk * c_blk * s_blk * itemsize
    params_bytes = 8 * C * param_itemsize
    vmem_limit = int(min(phys_vmem // 2,
                         blocks_bytes + params_bytes + (16 << 20)))

    cost = pl.CostEstimate(
        flops=2 * B * C * HW_pad,            # one mul + one add per element
        transcendentals=0,                   # exp() hoisted to the wrapper
        bytes_accessed=2 * B * C * HW_pad * itemsize + 2 * C * param_itemsize,
    )

    out = pl.pallas_call(
        functools.partial(_actnorm_kernel, c_blk=c_blk),
        out_shape=jax.ShapeDtypeStruct((B, C, HW_pad), x.dtype),
        grid=grid,
        in_specs=[
            pl.BlockSpec((b_blk, c_blk, s_blk), lambda b, c, s: (b, c, s)),
            pl.BlockSpec((1, C, 1), lambda b, c, s: (0, 0, 0)),
            pl.BlockSpec((1, C, 1), lambda b, c, s: (0, 0, 0)),
        ],
        out_specs=pl.BlockSpec((b_blk, c_blk, s_blk), lambda b, c, s: (b, c, s)),
        compiler_params=pltpu.CompilerParams(
            dimension_semantics=("parallel", "parallel", "parallel"),
            vmem_limit_bytes=vmem_limit),
        cost_estimate=cost,
    )(x2, scale, shift)

    if HW_pad != HW:
        out = out[:, :, :HW]
    return out.reshape(B, C, H, W)


# ----------------------------------------------------------------------------
# Module wrapper mirroring the PyTorch _ActNorm.
# ----------------------------------------------------------------------------
class _ActNorm:
    """JAX/Pallas port of glow-pytorch _ActNorm (4-D NCHW inputs)."""

    def __init__(self, num_features, scale=1.0):
        self.num_features = num_features
        self.scale = float(scale)
        self.bias = jnp.zeros((1, num_features, 1, 1), jnp.float32)
        self.logs = jnp.zeros((1, num_features, 1, 1), jnp.float32)
        self.inited = False
        self.training = True

    def _check_input_dim(self, input):
        assert input.ndim == 4 and input.shape[1] == self.num_features

    def initialize_parameters(self, input):
        # One-time data-dependent init (plain JAX reductions, not per-step).
        self._check_input_dim(input)
        if not self.training:
            return
        bias = -jnp.mean(input, axis=(0, 2, 3), keepdims=True)
        vars_ = jnp.mean((input + bias) ** 2, axis=(0, 2, 3), keepdims=True)
        logs = jnp.log(self.scale / (jnp.sqrt(vars_) + 1e-6))
        self.bias = bias.astype(jnp.float32)
        self.logs = logs.astype(jnp.float32)
        self.inited = True

    def __call__(self, input, logdet=None, reverse=False):
        if not self.inited:
            self.initialize_parameters(input)
        self._check_input_dim(input)
        output = _actnorm_apply(input, self.bias, self.logs, reverse=reverse)
        if logdet is not None:
            pixels = input.shape[2] * input.shape[3]
            dlogdet = jnp.sum(self.logs) * pixels
            logdet = logdet - dlogdet if reverse else logdet + dlogdet
        return output, logdet


if __name__ == "__main__":
    key = jax.random.PRNGKey(0)
    x = jax.random.normal(key, (2, 4, 16, 16), dtype=jnp.float32) * 2.0 + 0.5

    layer = _ActNorm(num_features=4, scale=1.0)

    # forward (initializes bias/logs from this minibatch)
    y, logdet = layer(x, logdet=jnp.zeros((), jnp.float32), reverse=False)
    y = jax.block_until_ready(y)
    assert y.shape == x.shape

    # After data-dependent init, output is per-channel zero-mean / unit-std.
    ch_mean = jnp.mean(y, axis=(0, 2, 3))
    ch_std = jnp.std(y, axis=(0, 2, 3))
    assert jnp.allclose(ch_mean, 0.0, atol=1e-4), ch_mean
    assert jnp.allclose(ch_std, 1.0, atol=1e-3), ch_std

    # Pure-JAX reference for the affine transform.
    y_ref = (x + layer.bias) * jnp.exp(layer.logs)
    assert jnp.allclose(y, y_ref, atol=1e-5, rtol=1e-5), "actnorm forward mismatch"

    # logdet reference
    dlogdet_ref = jnp.sum(layer.logs) * (16 * 16)
    assert jnp.allclose(logdet, dlogdet_ref, atol=1e-4, rtol=1e-5)

    # reverse must round-trip back to x and cancel the logdet contribution
    x_rec, logdet2 = layer(y, logdet=logdet, reverse=True)
    x_rec = jax.block_until_ready(x_rec)
    assert jnp.allclose(x_rec, x, atol=1e-5, rtol=1e-5), "actnorm reverse mismatch"
    assert jnp.allclose(logdet2, 0.0, atol=1e-4)

    print("KERNEL_OK")
</pallas_src>

<mosaic_0001>
module attributes {stable_mosaic.version = 11 : i64} {
  func.func @_actnorm_kernel(%arg0: i32, %arg1: i32, %arg2: i32, %arg3: memref<1x4x256xf32, #tpu.memory_space<vmem>>, %arg4: memref<1x4x1xf32, #tpu.memory_space<vmem>>, %arg5: memref<1x4x1xf32, #tpu.memory_space<vmem>>, %arg6: memref<1x4x256xf32, #tpu.memory_space<vmem>>) attributes {dimension_semantics = [#tpu.dimension_semantics<parallel>, #tpu.dimension_semantics<parallel>, #tpu.dimension_semantics<parallel>], iteration_bounds = array<i64: 2, 1, 1>, scalar_prefetch = 0 : i64, scratch_operands = 0 : i64, tpu.core_type = #tpu.core_type<tc>, window_params = [{transform_indices = @transform_0, window_bounds = array<i64: 1, 4, 256>}, {pipeline_mode = #tpu.pipeline_mode<synchronous>, transform_indices = @transform_1, window_bounds = array<i64: 1, 4, 1>}, {pipeline_mode = #tpu.pipeline_mode<synchronous>, transform_indices = @transform_2, window_bounds = array<i64: 1, 4, 1>}, {transform_indices = @transform_3, window_bounds = array<i64: 1, 4, 256>}]} {
    %c0 = arith.constant 0 : index
    %c0_0 = arith.constant 0 : index
    %c0_1 = arith.constant 0 : index
    %0 = vector.load %arg4[%c0, %c0_0, %c0_1] : memref<1x4x1xf32, #tpu.memory_space<vmem>>, vector<1x4x1xf32>
    %c0_2 = arith.constant 0 : index
    %c0_3 = arith.constant 0 : index
    %c0_4 = arith.constant 0 : index
    %1 = vector.load %arg5[%c0_2, %c0_3, %c0_4] : memref<1x4x1xf32, #tpu.memory_space<vmem>>, vector<1x4x1xf32>
    %c0_5 = arith.constant 0 : index
    %c0_6 = arith.constant 0 : index
    %c0_7 = arith.constant 0 : index
    %2 = vector.load %arg3[%c0_5, %c0_6, %c0_7] : memref<1x4x256xf32, #tpu.memory_space<vmem>>, vector<1x4x256xf32>
    %3 = vector.broadcast %0 : vector<1x4x1xf32> to vector<1x4x256xf32>
    %4 = arith.mulf %2, %3 : vector<1x4x256xf32>
    %5 = vector.broadcast %1 : vector<1x4x1xf32> to vector<1x4x256xf32>
    %6 = arith.addf %4, %5 : vector<1x4x256xf32>
    %c0_8 = arith.constant 0 : index
    %c0_9 = arith.constant 0 : index
    %c0_10 = arith.constant 0 : index
    %7 = vector.load %arg6[%c0_8, %c0_9, %c0_10] : memref<1x4x256xf32, #tpu.memory_space<vmem>>, vector<1x4x256xf32>
    tpu.vector_store %arg6[%c0_8, %c0_9, %c0_10], %6 {strides = array<i32>} : memref<1x4x256xf32, #tpu.memory_space<vmem>>, vector<1x4x256xf32>,
    return
  }
  func.func @transform_0(%arg0: i32, %arg1: i32, %arg2: i32) -> (i32, i32, i32) {
    %c0_i32 = arith.constant 0 : i32
    return %arg0, %arg1, %arg2 : i32, i32, i32
  }
  func.func @transform_1(%arg0: i32, %arg1: i32, %arg2: i32) -> (i32, i32, i32) {
    %c0_i32 = arith.constant 0 : i32
    %c0_i32_0 = arith.constant 0 : i32
    %c0_i32_1 = arith.constant 0 : i32
    %c0_i32_2 = arith.constant 0 : i32
    return %c0_i32, %c0_i32_0, %c0_i32_1 : i32, i32, i32
  }
  func.func @transform_2(%arg0: i32, %arg1: i32, %arg2: i32) -> (i32, i32, i32) {
    %c0_i32 = arith.constant 0 : i32
    %c0_i32_0 = arith.constant 0 : i32
    %c0_i32_1 = arith.constant 0 : i32
    %c0_i32_2 = arith.constant 0 : i32
    return %c0_i32, %c0_i32_0, %c0_i32_1 : i32, i32, i32
  }
  func.func @transform_3(%arg0: i32, %arg1: i32, %arg2: i32) -> (i32, i32, i32) {
    %c0_i32 = arith.constant 0 : i32
    return %arg0, %arg1, %arg2 : i32, i32, i32
  }
}

</mosaic_0001>

<bundles_post_ra>
// kernel: mul.8
= control target key start
LH: loop header
LB: loop body
LE: loop exit
PB: predicated region body
PF: predicated region fallthrough
CT: control target
= control target key end

     0   :  { %s34_s0 = inlined_call_operand.vmem [shape: f32[1,4,1], index: 0, kind: input, shape index: {}]   ;;  %s35_s1 = inlined_call_operand.vmem [shape: f32[1,4,1], index: 1, kind: input, shape index: {}]   ;;  %s36_s2 = inlined_call_operand.vmem [shape: f32[1,4,1], index: 2, kind: output, shape index: {}]  }
   0x1   :  { %v3_v0 = vld [vmem:[%s34_s0] sm:$0xf] }
   0x2   :  { %v4_v1 = vld [vmem:[%s35_s1] sm:$0xf] }
   0x3   :  { %v7_v2 = vmul.f32 %v4_v1, %v3_v0 }
   0x5   :  { %9 = vst [vmem:[%s36_s2] sm:$0xf] %v7_v2 }

// kernel: _actnorm_apply.1
= control target key start
LH: loop header
LB: loop body
LE: loop exit
PB: predicated region body
PF: predicated region fallthrough
CT: control target
= control target key end

     0   :  { %s469_s12 = smov 0   ;;  %s471_s13 = smov 0   ;;  %s508_s0 = inlined_call_operand.vmem [shape: f32[2,4,256], index: 0, kind: input, shape index: {}]   ;;  %s509_s1 = inlined_call_operand.vmem [shape: f32[1,4,1], index: 1, kind: input, shape index: {}]   ;;  %s510_s2 = inlined_call_operand.vmem [shape: f32[1,4,1], index: 2, kind: input, shape index: {}]   ;;  %s511_s3 = inlined_call_operand.vmem [shape: f32[2,4,256], index: 3, kind: output, shape index: {}]  }
   0x1   :  { %s473_s14 = smov 0  }
   0x2 LB: > { %s32_s15 = sadd.s32 1, %s441_s13  ;;  %p387_p0 = scmp.ge.s32.totalorder %s445_s14, 1  ;;  %s445_s14 = sphi %s473_s14, %s13_s14   ;;  %s441_s13 = sphi %s471_s13, %s513_s13   ;;  %s437_s12 = sphi %s469_s12, %s512_s12  }
   0x3   : > { %p34_p1 = scmp.ge.s32.totalorder %s32_s15, 2  ;;  %p173_p2 = scmp.lt.s32.totalorder %s445_s14, 3 }
   0x5   : > { %s515_s15 = smov (%p34_p1, %s32_s15), 0  ;;  %p174_p3 = pnand %p387_p0, %p173_p2 }
   0x6   : > { %v241_v0 = vld [vmem:[%s509_s1] sm:$0xf] (!%p174_p3)  ;;  %v447_v1 = vmov (!%p174_p3), 0   ;;  %p214_p4 = scmp.lt.s32.totalorder (!%p174_p3), %s437_s12, 1  ;;  %v448_v3 = vmov (!%p174_p3), 839922192   ;;  %v251_v5 = vlaneseq (!%p174_p3) }
   0x7   : > { %177 = sbr.rel (%p174_p3) target bundleno = 145 (0x91), region = 32  ;;  %422 = vset.pattern.permute.xlu0 (!%p174_p3), %v447_v1  ;;  %v242_v2 = vld [vmem:[%s510_s2] sm:$0xf] (!%p174_p3)  ;;  %v249_v4 = vunpack.c.l.s4 (!%p174_p3), %v448_v3 }
   0x8   : > { %246 = vperm.xlu0 (!%p174_p3), %422, %v241_v0   ;;  %v252_v7 = vshrl.u32 (!%p174_p3), %v251_v5, 7 }
   0x9   : > { %v250_v6 = vunpack.c.0.s8 (!%p174_p3), %v249_v4 }
   0xb   : > { %v253_v8 = vsub.s32 (!%p174_p3), %v250_v6, %v252_v7 }
   0xc   : > { %259 = vperm.xlu0 (!%p174_p3), %422, %v242_v2  }
   0xe   : > { %s517_s12 = smov (!%p214_p4, %s437_s12), 1 }
   0xf   : > { %s394_s20 = sshll.u32 %s517_s12, 3 }
  0x10   : > { %s225_s23 = scalar_lea.vmem %s508_s0, %s394_s20  ;;  %s239_s26 = scalar_lea.vmem %s511_s3, %s394_s20 }
  0x11   : > { %v243_v11 = vld [vmem:[%s225_s23] sm:$0xff] }
  0x87   : > { %v247_v9 = vpop.permute.xlu0 %246 }
  0x88   : > { %v254_v10 = vrot.slane %v247_v9, %v253_v8 }
  0x8a   : > { %v256_v13 = vmul.f32 %v254_v10, %v243_v11 }
  0x8b   : > { %v260_v12 = vpop.permute.xlu0 %259 }
  0x8c   : > { %v267_v14 = vrot.slane %v260_v12, %v253_v8 }
  0x8e   : > { %v269_v15 = vadd.f32 %v267_v14, %v256_v13 }
  0x90   : > { %270 = vst [vmem:[%s239_s26] sm:$0xff] %v269_v15 }
  0x91 PF: > { %s13_s14 = sadd.s32 1, %s445_s14   ;;  %s512_s12 = smov %s441_s13 }
  0x92   : > { %p10_p5 = scmp.ge.s32.totalorder %s13_s14, 4   ;;  %s513_s13 = smov %s515_s15 }
  0x94   :  { %12 = sbr.rel (!%p10_p5) target bundleno = 2 (0x2), region = 62 }

</bundles_post_ra>
